<compile_context>
chip_gen: v7x
topology: tpu7x:2x2x1
jax: 0.10.0
libtpu: 0.0.40
codegen_flags: <defaults>
</compile_context>

<pallas_src>
import functools
import math

import jax
import jax.numpy as jnp
from jax import lax
from jax.experimental import pallas as pl
from jax.experimental.pallas import tpu as pltpu


_NEG_INF = -1e30                     # finite "minus infinity" for masking
_VMEM_LIMIT = 48 * 1024 * 1024       # <= v7x's 64 MiB physical VMEM, > defaults


def _pick_tile(dim, candidates):
    """Largest candidate tile that evenly divides `dim`, else the full dim."""
    for c in candidates:
        if c <= dim and dim % c == 0:
            return c
    return dim


# ----------------------------------------------------------------------------
# Tiled linear: y = x @ W_t + b   (W_t already (in, out) — prepared host-side)
# ----------------------------------------------------------------------------
def _linear_kernel(x_ref, w_ref, b_ref, o_ref, acc_ref):
    @pl.when(pl.program_id(2) == 0)
    def _init():
        acc_ref[...] = jnp.zeros_like(acc_ref)

    acc_ref[...] += jnp.dot(x_ref[...], w_ref[...],
                            preferred_element_type=jnp.float32)

    @pl.when(pl.program_id(2) == pl.num_programs(2) - 1)
    def _finalize():
        o_ref[...] = (acc_ref[...] + b_ref[...]).astype(o_ref.dtype)


def _linear(x2d, w_t, bias, out_dtype,
            tm_cand=(512, 256, 128), tn_cand=(512, 256, 128),
            tk_cand=(1024, 512, 256, 128)):
    M, K = x2d.shape
    K2, N = w_t.shape
    assert K == K2
    tm = _pick_tile(M, tm_cand)
    if tm == M and M > 1024:
        # Do not fall back to a giant full-M block: pad rows to a multiple of
        # 128 (zero rows -> bias-only outputs, sliced off below).
        m_pad = ((M + 127) // 128) * 128
        out = _linear(jnp.pad(x2d, ((0, m_pad - M), (0, 0))), w_t, bias,
                      out_dtype, tm_cand, tn_cand, tk_cand)
        return out[:M]
    tn = _pick_tile(N, tn_cand)
    tk = _pick_tile(K, tk_cand)
    bias2d = bias.reshape(1, N).astype(jnp.float32)

    return pl.pallas_call(
        _linear_kernel,
        out_shape=jax.ShapeDtypeStruct((M, N), out_dtype),
        grid=(M // tm, N // tn, K // tk),
        in_specs=[
            pl.BlockSpec((tm, tk), lambda i, j, k: (i, k)),   # activation tile
            pl.BlockSpec((tk, tn), lambda i, j, k: (k, j)),   # weight tile (in, out)
            pl.BlockSpec((1, tn), lambda i, j, k: (0, j)),    # bias tile
        ],
        out_specs=pl.BlockSpec((tm, tn), lambda i, j, k: (i, j)),
        scratch_shapes=[pltpu.VMEM((tm, tn), jnp.float32)],
        compiler_params=pltpu.CompilerParams(
            dimension_semantics=("parallel", "parallel", "arbitrary"),
            vmem_limit_bytes=_VMEM_LIMIT),
    )(x2d, w_t, bias2d)


# ----------------------------------------------------------------------------
# Causal flash attention over (batch, head, q-tile, kv-tile)
# ----------------------------------------------------------------------------
def _flash_kernel(q_ref, k_ref, v_ref, o_ref, m_sc, l_sc, acc_sc,
                  *, tq, tkv, kv_len, padded_kv_len):
    qi = pl.program_id(2)
    ki = pl.program_id(3)
    q0 = qi * tq
    k0 = ki * tkv

    @pl.when(ki == 0)
    def _init():
        m_sc[...] = jnp.full_like(m_sc, _NEG_INF)
        l_sc[...] = jnp.zeros_like(l_sc)
        acc_sc[...] = jnp.zeros_like(acc_sc)

    # kv blocks entirely above the causal diagonal: DMA already elided by the
    # clamped K/V index_map; skip the compute too.
    @pl.when(k0 <= q0 + tq - 1)
    def _update():
        q = q_ref[0, 0]          # (tq, hd)  — 1/sqrt(hd) already folded into W_Q
        k = k_ref[0, 0]          # (tkv, hd)
        v = v_ref[0, 0]          # (tkv, hd)

        # Contract the last dim of both operands -> MXU-direct, no K transpose.
        s = lax.dot_general(q, k, (((1,), (1,)), ((), ())),
                            preferred_element_type=jnp.float32)   # (tq, tkv) f32

        rows = q0 + lax.broadcasted_iota(jnp.int32, s.shape, 0)
        cols = k0 + lax.broadcasted_iota(jnp.int32, s.shape, 1)
        invalid = cols > rows                       # causal mask
        if kv_len < padded_kv_len:                  # static: mask padded keys
            invalid = invalid | (cols >= kv_len)
        s = jnp.where(invalid, _NEG_INF, s)

        m_prev = m_sc[...]
        m_new = jnp.maximum(m_prev, jnp.max(s, axis=-1, keepdims=True))
        alpha = jnp.exp(m_prev - m_new)
        p = jnp.exp(s - m_new)
        l_sc[...] = alpha * l_sc[...] + jnp.sum(p, axis=-1, keepdims=True)
        acc_sc[...] = alpha * acc_sc[...] + jnp.dot(
            p.astype(v.dtype), v, preferred_element_type=jnp.float32)
        m_sc[...] = m_new

    @pl.when(ki == pl.num_programs(3) - 1)
    def _finalize():
        # Exact reciprocal of the (tq, 1) denominator (negligible cost, tight
        # parity with the PyTorch reference), applied once at the end.
        inv = pl.reciprocal(l_sc[...], approx=False)
        o_ref[0, 0] = (acc_sc[...] * inv).astype(o_ref.dtype)


def _flash_attention(q, k, v, out_dtype, seq_len, tq, tkv):
    B, nh, s_pad, hd = q.shape
    kernel = functools.partial(_flash_kernel, tq=tq, tkv=tkv,
                               kv_len=seq_len, padded_kv_len=s_pad)

    def q_map(b, h, qi, ki):
        return (b, h, qi, 0)

    def kv_map(b, h, qi, ki):
        # Clamp to the last causally-needed kv block: for masked-out iterations
        # the block index repeats, so Pallas skips the DMA entirely.
        last_needed = (qi * tq + tq - 1) // tkv
        return (b, h, jnp.minimum(ki, last_needed), 0)

    return pl.pallas_call(
        kernel,
        out_shape=jax.ShapeDtypeStruct((B, nh, s_pad, hd), out_dtype),
        grid=(B, nh, s_pad // tq, s_pad // tkv),
        in_specs=[
            pl.BlockSpec((1, 1, tq, hd), q_map),
            pl.BlockSpec((1, 1, tkv, hd), kv_map),
            pl.BlockSpec((1, 1, tkv, hd), kv_map),
        ],
        out_specs=pl.BlockSpec((1, 1, tq, hd), q_map),
        scratch_shapes=[
            pltpu.VMEM((tq, 1), jnp.float32),     # running max
            pltpu.VMEM((tq, 1), jnp.float32),     # running denominator
            pltpu.VMEM((tq, hd), jnp.float32),    # output accumulator
        ],
        compiler_params=pltpu.CompilerParams(
            dimension_semantics=("parallel", "parallel", "parallel", "arbitrary"),
            vmem_limit_bytes=_VMEM_LIMIT),
    )(q, k, v)


# ----------------------------------------------------------------------------
# Parameter prep (one-time, host-side) and full module forward
# ----------------------------------------------------------------------------
def prepare_params(w_qkv, b_qkv, w_o, b_o, num_heads, use_bf16_matmul=True):
    """Transpose weights to (in, out), fold 1/sqrt(head_size) into the Q slice,
    and cast to the MXU input dtype — done ONCE, outside the per-call path."""
    H = w_qkv.shape[1]
    assert w_qkv.shape[0] == 3 * H and H % num_heads == 0
    hd = H // num_heads
    scale = 1.0 / math.sqrt(hd)
    col_scale = jnp.concatenate([jnp.full((H,), scale, jnp.float32),
                                 jnp.ones((2 * H,), jnp.float32)])

    w_qkv_t = jnp.swapaxes(w_qkv, 0, 1).astype(jnp.float32) * col_scale[None, :]
    b_qkv_s = b_qkv.astype(jnp.float32) * col_scale
    w_o_t = jnp.swapaxes(w_o, 0, 1).astype(jnp.float32)

    dtype = jnp.bfloat16 if use_bf16_matmul else jnp.float32
    return {
        "w_qkv_t": w_qkv_t.astype(dtype),      # (H, 3H)
        "b_qkv": b_qkv_s,                      # (3H,) f32 — added into f32 acc
        "w_o_t": w_o_t.astype(dtype),          # (H, H)
        "b_o": b_o.astype(jnp.float32),        # (H,)  f32
        "compute_dtype": dtype,
        "num_heads": num_heads,
    }


def _seq_tiling(S):
    """Choose (padded_S, tq, tkv) for the attention grid."""
    cands = (512, 256, 128)
    if S % 128 == 0:
        return S, _pick_tile(S, cands), _pick_tile(S, cands)
    if S <= 1024:
        return S, S, S                 # single full-extent block (any size is legal)
    s_pad = ((S + 127) // 128) * 128   # pad + mask instead of a full-S block
    return s_pad, _pick_tile(s_pad, cands), _pick_tile(s_pad, cands)


def multihead_masked_attention_pallas(x, params):
    """x: (B, S, H); params from prepare_params."""
    B, S, H = x.shape
    nh = params["num_heads"]
    assert H % nh == 0
    hd = H // nh
    out_dtype = x.dtype
    cdt = params["compute_dtype"]

    s_pad, tq, tkv = _seq_tiling(S)
    xc = x.astype(cdt)
    if s_pad != S:
        xc = jnp.pad(xc, ((0, 0), (0, s_pad - S), (0, 0)))

    # 1) fused QKV projection (1/sqrt(hd) already folded into the Q columns)
    qkv = _linear(xc.reshape(B * s_pad, H), params["w_qkv_t"], params["b_qkv"], cdt)

    # 2) head split (XLA transpose; head_size kept as a full trailing block dim,
    #    see header note)
    qkv = qkv.reshape(B, s_pad, 3, nh, hd).transpose(2, 0, 3, 1, 4)
    q, k, v = qkv[0], qkv[1], qkv[2]

    # 3) causal flash attention
    av = _flash_attention(q, k, v, cdt, seq_len=S, tq=tq, tkv=tkv)  # (B,nh,s_pad,hd)

    # 4) merge heads, output projection
    av = av.transpose(0, 2, 1, 3).reshape(B * s_pad, H)
    out = _linear(av, params["w_o_t"], params["b_o"], out_dtype)
    out = out.reshape(B, s_pad, H)
    if s_pad != S:
        out = out[:, :S, :]
    return out


# ----------------------------------------------------------------------------
# Plain-JAX reference mirroring the PyTorch module (sanity check)
# ----------------------------------------------------------------------------
def _reference(x, w_qkv, b_qkv, w_o, b_o, num_heads):
    B, S, H = x.shape
    hd = H // num_heads
    qkv = jnp.einsum("bsh,oh->bso", x, w_qkv) + b_qkv
    Q, K, V = jnp.split(qkv, 3, axis=-1)

    def heads(t):
        return t.reshape(B, S, num_heads, hd).transpose(0, 2, 1, 3)

    Qh, Kh, Vh = heads(Q), heads(K), heads(V)
    scores = jnp.einsum("bnqh,bnkh->bnqk", Qh, Kh)
    causal = jnp.triu(jnp.ones((S, S), dtype=bool), k=1)
    scores = jnp.where(causal, -jnp.inf, scores) / jnp.sqrt(hd)
    A = jax.nn.softmax(scores, axis=-1)
    AV = jnp.einsum("bnqk,bnkh->bnqh", A, Vh)
    AV = AV.transpose(0, 2, 1, 3).reshape(B, S, H)
    return jnp.einsum("bsh,oh->bso", AV, w_o) + b_o


if __name__ == "__main__":
    batch, seq, hidden, num_heads = 2, 8, 32, 4

    key = jax.random.PRNGKey(0)
    kx, k1, k2, k3, k4 = jax.random.split(key, 5)

    bound = 1.0 / math.sqrt(hidden)
    x = jax.random.normal(kx, (batch, seq, hidden), dtype=jnp.float32)
    w_qkv = jax.random.uniform(k1, (3 * hidden, hidden), jnp.float32, -bound, bound)
    b_qkv = jax.random.uniform(k2, (3 * hidden,), jnp.float32, -bound, bound)
    w_o = jax.random.uniform(k3, (hidden, hidden), jnp.float32, -bound, bound)
    b_o = jax.random.uniform(k4, (hidden,), jnp.float32, -bound, bound)

    ref = _reference(x, w_qkv, b_qkv, w_o, b_o, num_heads)

    # f32 path: tight parity with the PyTorch module (exact reciprocal, f32 acc).
    params_f32 = prepare_params(w_qkv, b_qkv, w_o, b_o, num_heads,
                                use_bf16_matmul=False)
    out_f32 = jax.block_until_ready(multihead_masked_attention_pallas(x, params_f32))
    assert out_f32.shape == (batch, seq, hidden)
    assert jnp.allclose(out_f32, ref, atol=5e-3, rtol=5e-3), "f32 mismatch vs reference"

    # Default path: bf16 MXU inputs, f32 accumulation (looser tolerance is the
    # expected bf16 input-rounding error, not a kernel bug).
    params = prepare_params(w_qkv, b_qkv, w_o, b_o, num_heads)
    out = jax.block_until_ready(multihead_masked_attention_pallas(x, params))
    assert out.shape == (batch, seq, hidden)
    assert jnp.allclose(out, ref, atol=5e-2, rtol=5e-2), "bf16 mismatch vs reference"

    print("KERNEL_OK")
</pallas_src>

<mosaic_0001>
module attributes {stable_mosaic.version = 11 : i64} {
  func.func @_linear_kernel(%arg0: i32, %arg1: i32, %arg2: i32, %arg3: memref<16x32xf32, #tpu.memory_space<vmem>>, %arg4: memref<32x96xf32, #tpu.memory_space<vmem>>, %arg5: memref<1x96xf32, #tpu.memory_space<vmem>>, %arg6: memref<16x96xf32, #tpu.memory_space<vmem>>, %arg7: memref<16x96xf32, #tpu.memory_space<vmem>>) attributes {dimension_semantics = [#tpu.dimension_semantics<parallel>, #tpu.dimension_semantics<parallel>, #tpu.dimension_semantics<arbitrary>], iteration_bounds = array<i64: 1, 1, 1>, scalar_prefetch = 0 : i64, scratch_operands = 1 : i64, tpu.core_type = #tpu.core_type<tc>, window_params = [{transform_indices = @transform_0, window_bounds = array<i64: 16, 32>}, {transform_indices = @transform_1, window_bounds = array<i64: 32, 96>}, {transform_indices = @transform_2, window_bounds = array<i64: 1, 96>}, {transform_indices = @transform_3, window_bounds = array<i64: 16, 96>}]} {
    %c0_i32 = arith.constant 0 : i32
    %0 = arith.cmpi eq, %arg2, %c0_i32 : i32
    %1 = arith.extui %0 : i1 to i32
    %c0_i32_0 = arith.constant 0 : i32
    %2 = arith.cmpi ne, %1, %c0_i32_0 : i32
    scf.if %2 {
      %cst_10 = arith.constant 0.000000e+00 : f32
      %12 = vector.broadcast %cst_10 : f32 to vector<16x96xf32>
      %c0_11 = arith.constant 0 : index
      %c0_12 = arith.constant 0 : index
      %13 = vector.load %arg7[%c0_11, %c0_12] : memref<16x96xf32, #tpu.memory_space<vmem>>, vector<16x96xf32>
      tpu.vector_store %arg7[%c0_11, %c0_12], %12 {strides = array<i32>} : memref<16x96xf32, #tpu.memory_space<vmem>>, vector<16x96xf32>,
    } else {
    }
    %c0 = arith.constant 0 : index
    %c0_1 = arith.constant 0 : index
    %3 = vector.load %arg7[%c0, %c0_1] : memref<16x96xf32, #tpu.memory_space<vmem>>, vector<16x96xf32>
    %c0_2 = arith.constant 0 : index
    %c0_3 = arith.constant 0 : index
    %4 = vector.load %arg3[%c0_2, %c0_3] : memref<16x32xf32, #tpu.memory_space<vmem>>, vector<16x32xf32>
    %c0_4 = arith.constant 0 : index
    %c0_5 = arith.constant 0 : index
    %5 = vector.load %arg4[%c0_4, %c0_5] : memref<32x96xf32, #tpu.memory_space<vmem>>, vector<32x96xf32>
    %cst = arith.constant dense<0.000000e+00> : vector<16x96xf32>
    %6 = tpu.matmul %4, %5, %cst {dimension_numbers = #tpu.dot_dimension_numbers<[1], [0], [0], [1], [0, 0, 1, 1], [], []>} : vector<16x32xf32>, vector<32x96xf32>, vector<16x96xf32> -> vector<16x96xf32>
    %7 = arith.addf %3, %6 : vector<16x96xf32>
    %c0_6 = arith.constant 0 : index
    %c0_7 = arith.constant 0 : index
    %8 = vector.load %arg7[%c0_6, %c0_7] : memref<16x96xf32, #tpu.memory_space<vmem>>, vector<16x96xf32>
    tpu.vector_store %arg7[%c0_6, %c0_7], %7 {strides = array<i32>} : memref<16x96xf32, #tpu.memory_space<vmem>>, vector<16x96xf32>,
    %c0_i32_8 = arith.constant 0 : i32
    %9 = arith.cmpi eq, %arg2, %c0_i32_8 : i32
    %10 = arith.extui %9 : i1 to i32
    %c0_i32_9 = arith.constant 0 : i32
    %11 = arith.cmpi ne, %10, %c0_i32_9 : i32
    scf.if %11 {
      %c0_10 = arith.constant 0 : index
      %c0_11 = arith.constant 0 : index
      %12 = vector.load %arg7[%c0_10, %c0_11] : memref<16x96xf32, #tpu.memory_space<vmem>>, vector<16x96xf32>
      %c0_12 = arith.constant 0 : index
      %c0_13 = arith.constant 0 : index
      %13 = vector.load %arg5[%c0_12, %c0_13] : memref<1x96xf32, #tpu.memory_space<vmem>>, vector<1x96xf32>
      %14 = vector.broadcast %13 : vector<1x96xf32> to vector<16x96xf32>
      %15 = arith.addf %12, %14 : vector<16x96xf32>
      %c0_14 = arith.constant 0 : index
      %c0_15 = arith.constant 0 : index
      %16 = vector.load %arg6[%c0_14, %c0_15] : memref<16x96xf32, #tpu.memory_space<vmem>>, vector<16x96xf32>
      tpu.vector_store %arg6[%c0_14, %c0_15], %15 {strides = array<i32>} : memref<16x96xf32, #tpu.memory_space<vmem>>, vector<16x96xf32>,
    } else {
    }
    return
  }
  func.func @transform_0(%arg0: i32, %arg1: i32, %arg2: i32) -> (i32, i32) {
    %c0_i32 = arith.constant 0 : i32
    return %arg0, %arg2 : i32, i32
  }
  func.func @transform_1(%arg0: i32, %arg1: i32, %arg2: i32) -> (i32, i32) {
    %c0_i32 = arith.constant 0 : i32
    return %arg2, %arg1 : i32, i32
  }
  func.func @transform_2(%arg0: i32, %arg1: i32, %arg2: i32) -> (i32, i32) {
    %c0_i32 = arith.constant 0 : i32
    %c0_i32_0 = arith.constant 0 : i32
    return %c0_i32, %arg1 : i32, i32
  }
  func.func @transform_3(%arg0: i32, %arg1: i32, %arg2: i32) -> (i32, i32) {
    %c0_i32 = arith.constant 0 : i32
    return %arg0, %arg1 : i32, i32
  }
}

</mosaic_0001>

<bundles_post_ra>
// kernel: tpu_custom_call.1
= control target key start
LH: loop header
LB: loop body
LE: loop exit
PB: predicated region body
PF: predicated region fallthrough
CT: control target
= control target key end

     0   :  { %8 = vsyncpa [#allocation4], 0  ;;  %s365_s0 = inlined_call_operand.hbm [shape: f32[16,32], index: 0, kind: input, shape index: {}]   ;;  %s366_s1 = inlined_call_operand.hbm [shape: f32[32,96], index: 1, kind: input, shape index: {}]   ;;  %s367_s2 = inlined_call_operand.vmem [shape: f32[1,96], index: 2, kind: input, shape index: {}]   ;;  %s368_s3 = inlined_call_operand.hbm [shape: f32[16,96], index: 3, kind: output, shape index: {}]  }
   0x1   :  { %9 = vsyncpa [#allocation7], 0 }
   0x2   :  { %10 = vsyncpa [#allocation5], 0  ;;  %s285_s12 = smov [#allocation3]   ;;  %s213_s16 = scalar_lea.hbm %s365_s0, 256 }
   0x3   :  { %s16_s13 = sshll.u32 %s285_s12, 4  ;;  %p214_p0 = scmp.ne.s32.totalorder %s365_s0, %s213_s16  ;;  %s17_s13 = int_to_ptr.vmem [resolvable:$true] %s16_s13 }
   0x4   :  { %p217_p1 = scmp.lt.u32.totalorder %s213_s16, %s365_s0 }
   0x6   :  { %p219_p2 = pnand %p217_p1, %p214_p0 }
   0x8   :  { %222 = shalt.err (!%p219_p2)
}
   0x9   :  { %s223_s21 = scalar_lea.vmem %s17_s13, 256  ;;  %p228_p4 = scmp.lt.s32.totalorder %s17_s13, %s17_s13 }
   0xa   :  { %p224_p3 = scmp.ne.s32.totalorder %s17_s13, %s223_s21  ;;  %p229_p5 = scmp.lt.s32.totalorder %s223_s21, %s223_s21 }
   0xc   :  { %p230_p6 = por %p229_p5, %p228_p4 }
   0xe   :  { %p231_p7 = pnand %p230_p6, %p224_p3 }
  0x10   :  { %234 = shalt.err (!%p231_p7)
}
  0x11   :  { %s286_s22 = smov 128   ;;  %s287_s23 = smov 8  }
  0x12   :  { %22 = dma.hbm_to_vmem [thread:$0]  %s365_s0, 256, %s17_s13, [#allocation4], %s286_s22, %s286_s22, %s287_s23  }
  0x13   :  { %s288_s26 = smov [#allocation6]   ;;  %s235_s30 = scalar_lea.hbm %s366_s1, 512 }
  0x14   :  { %s28_s27 = sshll.u32 %s288_s26, 4  ;;  %p236_p8 = scmp.ne.s32.totalorder %s366_s1, %s235_s30  ;;  %s29_s27 = int_to_ptr.vmem [resolvable:$true] %s28_s27 }
  0x15   :  { %p239_p9 = scmp.lt.u32.totalorder %s235_s30, %s366_s1 }
  0x17   :  { %p241_p10 = pnand %p239_p9, %p236_p8 }
  0x19   :  { %244 = shalt.err (!%p241_p10)
}
  0x1a   :  { %s245_s8 = scalar_lea.vmem %s29_s27, 512  ;;  %p250_p12 = scmp.lt.s32.totalorder %s29_s27, %s29_s27 }
  0x1b   :  { %p246_p11 = scmp.ne.s32.totalorder %s29_s27, %s245_s8  ;;  %p251_p13 = scmp.lt.s32.totalorder %s245_s8, %s245_s8 }
  0x1d   :  { %p252_p0 = por %p251_p13, %p250_p12 }
  0x1f   :  { %p253_p1 = pnand %p252_p0, %p246_p11 }
  0x21   :  { %256 = shalt.err (!%p253_p1)
}
  0x22   :  { %34 = dma.hbm_to_vmem [thread:$0]  %s366_s1, 512, %s29_s27, [#allocation7], %s286_s22, %s286_s22, %s287_s23  }
  0x23   :  { %279 = dma.done.wait [#allocation4], 256  }
  0x24   :  { %280 = vsyncadd [#allocation4], 4294967040 }
  0x25   :  { %281 = dma.done.wait [#allocation7], 512  }
  0x26   :  { %282 = vsyncadd [#allocation7], 4294966784  ;;  %vm47_vm0 = vcmask 785408   ;;  %v289_v0 = vmov 0.0   ;;  %vm58_vm1 = vcmask 261120   ;;  %v54_v1 = vld [vmem:[#allocation6] sm:$0xff] }
  0x27   :  { %49 = vst.msk [vmem:[#allocation2 + $0x8] sm:$0xff] %vm47_vm0, %v289_v0  ;;  %48 = vst.msk [vmem:[#allocation2] sm:$0xff] %vm47_vm0, %v289_v0  ;;  %v55_v2 = vld [vmem:[#allocation6 + $0x8] sm:$0xff]  ;;  %v56_v3 = vld [vmem:[#allocation6 + $0x10] sm:$0xff]  ;;  %s290_s11 = smov [#allocation8]  }
  0x28   :  { %v199_v4 = vpack.c.bf16 %v55_v2, %v54_v1  ;;  %v57_v5 = vld [vmem:[#allocation6 + $0x18] sm:$0xff]  ;;  %v52_v6 = vld [vmem:[#allocation3] sm:$0xff]  ;;  %v181_v15 = vld [vmem:[%s367_s2] ss:$0 sm:$0xff]  ;;  %s166_s12 = sshll.u32 %s290_s11, 4  ;;  %s167_s12 = int_to_ptr.vmem [resolvable:$true] %s166_s12 }
  0x29   :  { %v203_v7 = vpack.c.bf16 %v57_v5, %v56_v3  ;;  %196 = vmatprep.mubr.msk.f32.mxu0 %vm58_vm1, %v52_v6  ;;  %v53_v8 = vld [vmem:[#allocation3 + $0x8] sm:$0xff]  ;;  %s257_s13 = scalar_lea.vmem %s167_s12, 256  ;;  %p262_p3 = scmp.lt.s32.totalorder %s167_s12, %s167_s12 }
  0x2a   :  { %200 = vmatprep.subr.bf16.mxu0 %v199_v4  ;;  %p258_p2 = scmp.ne.s32.totalorder %s167_s12, %s257_s13  ;;  %p263_p4 = scmp.lt.s32.totalorder %s257_s13, %s257_s13 }
  0x2b   :  { %202 = vmatpush3.bf16.msra.mxu0 %v199_v4 }
  0x2c   :  { %204 = vmatprep.subr.bf16.mxu0 %v203_v7  ;;  %p264_p5 = por %p263_p4, %p262_p3 }
  0x2e   :  { %v51_v9 = vld [vmem:[#allocation2 + $0x8] sm:$0xff]  ;;  %v50_v10 = vld [vmem:[#allocation2] sm:$0xff]  ;;  %p265_p6 = pnand %p264_p5, %p258_p2 }
  0x2f   :  { %206 = vmatpush3.bf16.msra.mxu0 %v203_v7 }
  0x32   :  { %197 = vmatmul.mubr.msk.f32.vlgmr.msra.gmra.mrb[0].mxu0 %vm58_vm1, %v53_v8 }
 0x105   :  { %v198_v11 = vpop.f32.mrb[0].mxu0 }
 0x106   :  { %v141_v12 = vadd.f32 %v198_v11, %v51_v9  ;;  %v131_v13 = vpop.f32.mrb[1].mxu0 }
 0x107   :  { %v140_v14 = vadd.f32 %v131_v13, %v50_v10 }
 0x108   :  { %144 = vst.msk [vmem:[#allocation2 + $0x8] sm:$0xff] %vm47_vm0, %v141_v12 }
 0x109   :  { %143 = vst.msk [vmem:[#allocation2] sm:$0xff] %vm47_vm0, %v140_v14 }
 0x10f   :  { %v149_v16 = vld [vmem:[#allocation2 + $0x8] sm:$0xff] }
 0x110   :  { %v148_v17 = vld [vmem:[#allocation2] sm:$0xff]  ;;  %v158_v18 = vadd.f32 %v181_v15, %v149_v16 }
 0x111   :  { %v157_v19 = vadd.f32 %v181_v15, %v148_v17 }
 0x112   :  { %160 = vst.msk [vmem:[#allocation8 + $0x8] sm:$0xff] %vm47_vm0, %v158_v18 }
 0x113   :  { %159 = vst.msk [vmem:[#allocation8] sm:$0xff] %vm47_vm0, %v157_v19 }
 0x114   :  { %268 = shalt.err (!%p265_p6)
}
 0x115   :  { %s269_s15 = scalar_lea.hbm %s368_s3, 256 }
 0x116   :  { %p270_p7 = scmp.ne.s32.totalorder %s368_s3, %s269_s15  ;;  %p273_p8 = scmp.lt.u32.totalorder %s269_s15, %s368_s3 }
 0x118   :  { %p275_p9 = pnand %p273_p8, %p270_p7 }
 0x11a   :  { %278 = shalt.err (!%p275_p9)
}
 0x11b   :  { %172 = dma.vmem_to_hbm [thread:$0]  %s167_s12, 256, %s368_s3, [#allocation5], %s286_s22, %s286_s22, %s287_s23  }
 0x11c   :  { %283 = dma.done.wait [#allocation5], 256  }
 0x11d   :  { %284 = vsyncadd [#allocation5], 4294967040 }
 0x11e   :  { %176 = vsyncpa [#allocation4], 1 }
 0x11f   :  { %177 = vsyncpa [#allocation7], 1 }
 0x120   :  { %178 = vsyncpa [#allocation5], 1 }

</bundles_post_ra>
